<compile_context>
chip_gen: v5e
topology: v5e:2x2
jax: 0.10.0
libtpu: 0.0.40
codegen_flags: <defaults>
</compile_context>

<pallas_src>
import functools
from typing import NamedTuple, Tuple

import jax
import jax.numpy as jnp
import numpy as np
from jax.experimental import pallas as pl
from jax.experimental.pallas import tpu as pltpu

_LANE = 128


def _round_up(x: int, m: int) -> int:
    return ((x + m - 1) // m) * m


def _sublane_multiple(dtype) -> int:
    # 8 rows for f32, 16 for bf16, 32 for int8/fp8 (sub-32-bit dtypes pack sublanes).
    return max(8, 32 // jnp.dtype(dtype).itemsize)


@functools.lru_cache(maxsize=None)
def _vmem_budgets():
    """(vmem_limit_bytes, fused_weight_budget_bytes), per chip generation."""
    cap = 64 * 1024 * 1024  # conservative default (v7x per-TC VMEM)
    try:
        cap = int(pltpu.get_tpu_info().vmem_capacity_bytes)
    except Exception:
        pass
    limit = min((cap * 3) // 4, cap - 8 * 1024 * 1024)   # ~48 MiB on v7x, ~96 MiB on v5e/v6e
    fused_budget = max(limit - 8 * 1024 * 1024, limit // 2)
    return limit, fused_budget


# ---------------------------------------------------------------------------
# One-time parameter preparation (pad + cast ONCE, not per forward call)
# ---------------------------------------------------------------------------
class PreparedMLP(NamedTuple):
    weights: Tuple[Tuple[jax.Array, jax.Array], ...]  # (W [pk_in,pk_out] mxu_dtype, b [1,pk_out] f32)
    dims: Tuple[int, ...]                              # original [in, hidden..., out]
    pdims: Tuple[int, ...]                             # lane-padded dims
    mxu_dtype: jnp.dtype


def prepare_mlp_params(params, compute_dtype=None) -> PreparedMLP:
    """Zero-pad feature dims to multiples of 128 and cast weights to the MXU dtype.

    compute_dtype: dtype fed to the MXU.  bfloat16 is recommended on ALL TPU
    generations (v5e, v6e and v7x all have bf16-native MXUs; accumulation,
    bias-add and ReLU stay f32).  float8_e4m3fn is an option on v7x if the
    model tolerates it.  None -> keep the parameter dtype (exact f32 path).
    """
    dims = [params[0][0].shape[0]] + [w.shape[1] for (w, _) in params]
    pdims = [_round_up(d, _LANE) for d in dims]
    mxu_dtype = (jnp.dtype(compute_dtype) if compute_dtype is not None
                 else jnp.dtype(params[0][0].dtype))
    prepped = []
    for i, (w, b) in enumerate(params):
        kin, kout = w.shape
        wp = jnp.pad(w, ((0, pdims[i] - kin), (0, pdims[i + 1] - kout))).astype(mxu_dtype)
        bp = jnp.pad(b, ((0, pdims[i + 1] - kout),)).reshape(1, -1).astype(jnp.float32)
        prepped.append((wp, bp))
    return PreparedMLP(tuple(prepped), tuple(dims), tuple(pdims), mxu_dtype)


# ---------------------------------------------------------------------------
# Fused multi-layer kernel: one grid axis over M row-tiles, layer loop inside.
# refs = (x, w0, b0, w1, b1, ..., w_{L-1}, b_{L-1}, out)
# ---------------------------------------------------------------------------
def _fused_mlp_kernel(*refs, num_layers: int):
    x_ref = refs[0]
    o_ref = refs[-1]
    h = x_ref[...]
    for i in range(num_layers):
        w_ref = refs[1 + 2 * i]
        b_ref = refs[2 + 2 * i]
        y = jnp.dot(h.astype(w_ref.dtype), w_ref[...],
                    preferred_element_type=jnp.float32)   # MXU, f32 accumulation
        y = y + b_ref[...]                                 # bias kept f32
        if i < num_layers - 1:
            y = jnp.maximum(y, 0.0)                        # ReLU on all but last layer
        h = y                                              # stays f32 between layers
    o_ref[...] = h.astype(o_ref.dtype)


def _mlp_fused_pallas(x2d, prepared: PreparedMLP, tm: int, out_dtype,
                      *, single_buffer_weights: bool):
    M, kp0 = x2d.shape              # M already padded to a multiple of tm
    grid_m = M // tm
    vmem_limit, _ = _vmem_budgets()
    out_pdim = prepared.pdims[-1]

    def _const_spec(shape):
        if single_buffer_weights:
            # Block index never changes across the M grid -> single VMEM buffer.
            return pl.BlockSpec(shape, lambda i: (0, 0), pipeline_mode=pl.Buffered(1))
        return pl.BlockSpec(shape, lambda i: (0, 0))

    in_specs = [pl.BlockSpec((tm, kp0), lambda i: (i, 0))]
    args = [x2d]
    flops = 0
    bytes_accessed = x2d.size * x2d.dtype.itemsize
    for (w, b) in prepared.weights:
        kin, kout = w.shape
        in_specs.append(_const_spec((kin, kout)))
        in_specs.append(_const_spec((1, kout)))
        args += [w, b]
        flops += 2 * M * kin * kout
        bytes_accessed += w.size * w.dtype.itemsize + b.size * b.dtype.itemsize
    bytes_accessed += M * out_pdim * jnp.dtype(out_dtype).itemsize

    return pl.pallas_call(
        functools.partial(_fused_mlp_kernel, num_layers=len(prepared.weights)),
        out_shape=jax.ShapeDtypeStruct((M, out_pdim), out_dtype),
        grid=(grid_m,),
        in_specs=in_specs,
        out_specs=pl.BlockSpec((tm, out_pdim), lambda i: (i, 0)),
        compiler_params=pltpu.CompilerParams(
            dimension_semantics=("parallel",),
            vmem_limit_bytes=vmem_limit),
        cost_estimate=pl.CostEstimate(
            flops=flops, transcendentals=0, bytes_accessed=bytes_accessed),
    )(*args)


def _fused_fits_vmem(tm, pdims, mxu_dtype, budget, single_buffer_weights=True):
    """Conservative VMEM model for the fused kernel."""
    wbytes = jnp.dtype(mxu_dtype).itemsize
    weight_bytes = sum(pdims[i] * pdims[i + 1] * wbytes + pdims[i + 1] * 4
                       for i in range(len(pdims) - 1))
    weight_bytes *= 1 if single_buffer_weights else 2        # Buffered(1) -> no double-buffer
    io_bytes = 2 * tm * (pdims[0] * wbytes + pdims[-1] * 4)  # double-buffered x / out tiles
    inter_bytes = 3 * tm * max(pdims) * 4                    # h + cast copy + matmul result tile
    return weight_bytes + io_bytes + inter_bytes <= budget


def _choose_tm(M, sub_mult, max_tm=512):
    M = max(int(M), 1)
    if M <= 128:
        # Tiny M: fused kernel is weight-DMA bound; keep grid_m == 1 so megacore
        # (v7x) sharding does not duplicate the weight DMA on both TensorCores.
        return _round_up(M, sub_mult)
    # Larger M: compute-bound; ensure grid_m >= 2 so both v7x cores get work,
    # with row tiles up to 512 (per-step DMA is only the x/out row tiles).
    return min(max_tm, _round_up(pl.cdiv(M, 2), sub_mult))


# ---------------------------------------------------------------------------
# Fallback: per-layer tiled Linear(+ReLU) with M/N/K tiling + f32 accumulator.
# Used when the layer widths are too large to keep all weights VMEM-resident.
# TODO(synk): for widths exceeding the fused budget, stream weight K/N tiles with
# pltpu.emit_pipeline while keeping the activation row-tile VMEM-resident, which
# would remove the inter-layer activation HBM round trips of this fallback.
# ---------------------------------------------------------------------------
def _tiled_linear_kernel(x_ref, w_ref, b_ref, o_ref, acc_ref, *, apply_relu: bool):
    k = pl.program_id(2)

    @pl.when(k == 0)
    def _():
        acc_ref[...] = jnp.zeros_like(acc_ref)

    acc_ref[...] += jnp.dot(x_ref[...], w_ref[...],
                            preferred_element_type=jnp.float32)

    @pl.when(k == pl.num_programs(2) - 1)
    def _():
        y = acc_ref[...] + b_ref[...]
        if apply_relu:
            y = jnp.maximum(y, 0.0)
        o_ref[...] = y.astype(o_ref.dtype)


def _linear_tiled_pallas(x2d, w, b2d, *, apply_relu, out_dtype, sub_mult,
                         tm=256, tn=512, tk=1024):
    M, K = x2d.shape
    K2, N = w.shape
    assert K == K2, (K, K2)
    vmem_limit, _ = _vmem_budgets()
    tm = min(tm, _round_up(M, sub_mult))
    tn = min(tn, _round_up(N, _LANE))
    tk = min(tk, _round_up(K, _LANE))
    mp, kp, np_ = _round_up(M, tm), _round_up(K, tk), _round_up(N, tn)

    xp = jnp.pad(x2d, ((0, mp - M), (0, kp - K)))
    wp = jnp.pad(w, ((0, kp - K), (0, np_ - N)))
    bp = jnp.pad(b2d, ((0, 0), (0, np_ - N)))

    grid = (mp // tm, np_ // tn, kp // tk)
    out = pl.pallas_call(
        functools.partial(_tiled_linear_kernel, apply_relu=apply_relu),
        out_shape=jax.ShapeDtypeStruct((mp, np_), out_dtype),
        grid=grid,
        in_specs=[
            pl.BlockSpec((tm, tk), lambda i, j, k: (i, k)),
            pl.BlockSpec((tk, tn), lambda i, j, k: (k, j)),
            pl.BlockSpec((1, tn), lambda i, j, k: (0, j)),
        ],
        out_specs=pl.BlockSpec((tm, tn), lambda i, j, k: (i, j)),
        scratch_shapes=[pltpu.VMEM((tm, tn), jnp.float32)],
        compiler_params=pltpu.CompilerParams(
            dimension_semantics=("parallel", "parallel", "arbitrary"),
            vmem_limit_bytes=vmem_limit),
        cost_estimate=pl.CostEstimate(
            flops=2 * mp * kp * np_, transcendentals=0,
            bytes_accessed=(xp.size * xp.dtype.itemsize
                            + wp.size * wp.dtype.itemsize
                            + bp.size * bp.dtype.itemsize
                            + mp * np_ * jnp.dtype(out_dtype).itemsize)),
    )(xp, wp, bp)
    return out[:M, :N]


# ---------------------------------------------------------------------------
# Parameters & forward wrapper
# ---------------------------------------------------------------------------
def init_mlp_params(key, input_dim, hidden_dim, output_dim, num_layers,
                    dtype=jnp.float32):
    """Layer i maps dims[i] -> dims[i+1]; weight stored (in, out) = W^T of nn.Linear."""
    h = [hidden_dim] * (num_layers - 1)
    dims = [input_dim] + h + [output_dim]
    params = []
    for n_in, n_out in zip(dims[:-1], dims[1:]):
        key, kw, kb = jax.random.split(key, 3)
        bound = 1.0 / np.sqrt(n_in)  # same scale as nn.Linear default init
        w = jax.random.uniform(kw, (n_in, n_out), dtype, -bound, bound)
        b = jax.random.uniform(kb, (n_out,), dtype, -bound, bound)
        params.append((w, b))
    return params


def mlp_forward(x, params, *, compute_dtype=None, force_tiled=False):
    """Apply the MLP (ReLU after every layer except the last).

    `params` may be a raw list of (W, b) or a PreparedMLP from
    prepare_mlp_params() -- prefer preparing ONCE and reusing it, so weights are
    not re-padded / re-cast (a full HBM pass) on every call.
    """
    prepared = (params if isinstance(params, PreparedMLP)
                else prepare_mlp_params(params, compute_dtype))

    lead_shape = x.shape[:-1]
    M = int(np.prod(lead_shape)) if lead_shape else 1
    k0 = x.shape[-1]
    assert k0 == prepared.dims[0], (k0, prepared.dims[0])
    out_dim = prepared.dims[-1]
    out_dtype = x.dtype
    mxu_dtype = prepared.mxu_dtype
    pdims = prepared.pdims
    sub_mult = _sublane_multiple(mxu_dtype)
    _, fused_budget = _vmem_budgets()

    x2d = x.reshape(M, k0)

    tm = _choose_tm(M, sub_mult)
    while tm > sub_mult and not _fused_fits_vmem(tm, pdims, mxu_dtype, fused_budget):
        tm = max(sub_mult, _round_up(tm // 2, sub_mult))

    use_fused = (not force_tiled) and _fused_fits_vmem(tm, pdims, mxu_dtype, fused_budget)

    if use_fused:
        mp = _round_up(M, tm)
        xp = jnp.pad(x2d, ((0, mp - M), (0, pdims[0] - k0))).astype(mxu_dtype)
        try:
            out = _mlp_fused_pallas(xp, prepared, tm, out_dtype,
                                    single_buffer_weights=True)
            if hasattr(out, "block_until_ready"):
                out.block_until_ready()
        except Exception:
            # Installed Pallas rejected Buffered(1) (or it OOM'd): use default specs.
            out = _mlp_fused_pallas(xp, prepared, tm, out_dtype,
                                    single_buffer_weights=False)
        out = out[:M, :out_dim]
    else:
        # Per-layer tiled path; intermediates are emitted in the MXU dtype directly
        # from the kernel epilogue (no extra cast op / half the activation bytes).
        h = jnp.pad(x2d, ((0, 0), (0, pdims[0] - k0))).astype(mxu_dtype)
        num_layers = len(prepared.weights)
        for i, (wp, bp) in enumerate(prepared.weights):
            last = i == num_layers - 1
            h = _linear_tiled_pallas(
                h, wp, bp,
                apply_relu=not last,
                out_dtype=(out_dtype if last else mxu_dtype),
                sub_mult=sub_mult)
        out = h[:, :out_dim]

    return out.reshape(*lead_shape, out_dim)


def mlp_forward_ref(x, params):
    """Pure-JAX reference for verification."""
    h = x
    num_layers = len(params)
    for i, (w, b) in enumerate(params):
        h = h @ w + b
        if i < num_layers - 1:
            h = jnp.maximum(h, 0.0)
    return h


if __name__ == "__main__":
    key = jax.random.PRNGKey(0)
    kx, kp = jax.random.split(key)

    batch, seq = 2, 8
    input_dim, hidden_dim, output_dim, num_layers = 32, 32, 16, 3

    x = jax.random.normal(kx, (batch, seq, input_dim), dtype=jnp.float32)
    params = init_mlp_params(kp, input_dim, hidden_dim, output_dim, num_layers)

    ref = mlp_forward_ref(x, params)

    # One-time parameter preparation (pad + cast once, reused across calls).
    prep_f32 = prepare_mlp_params(params)                               # exact f32 MXU feed
    prep_bf16 = prepare_mlp_params(params, compute_dtype=jnp.bfloat16)  # recommended on v5e/v6e/v7x

    # 1) Fused f32 path.
    out = jax.block_until_ready(mlp_forward(x, prep_f32))
    assert out.shape == (batch, seq, output_dim), out.shape
    np.testing.assert_allclose(np.asarray(out), np.asarray(ref), rtol=1e-5, atol=1e-5)

    # 2) Fused bf16-fed MXU path (f32 accumulation).
    out_bf16 = jax.block_until_ready(mlp_forward(x, prep_bf16))
    np.testing.assert_allclose(np.asarray(out_bf16), np.asarray(ref), rtol=1e-1, atol=5e-2)

    # 3) Tiled per-layer fallback (exercised here explicitly; normally only for
    #    layer widths whose weights don't fit the per-generation VMEM budget).
    out_tiled = jax.block_until_ready(mlp_forward(x, prep_f32, force_tiled=True))
    np.testing.assert_allclose(np.asarray(out_tiled), np.asarray(ref), rtol=1e-5, atol=1e-5)

    out_tiled_bf16 = jax.block_until_ready(mlp_forward(x, prep_bf16, force_tiled=True))
    np.testing.assert_allclose(np.asarray(out_tiled_bf16), np.asarray(ref), rtol=1e-1, atol=5e-2)

    print("KERNEL_OK")
</pallas_src>

<mosaic_0001>
module attributes {stable_mosaic.version = 11 : i64} {
  func.func @_fused_mlp_kernel(%arg0: i32, %arg1: memref<16x128xf32, #tpu.memory_space<vmem>>, %arg2: memref<128x128xf32, #tpu.memory_space<vmem>>, %arg3: memref<1x128xf32, #tpu.memory_space<vmem>>, %arg4: memref<128x128xf32, #tpu.memory_space<vmem>>, %arg5: memref<1x128xf32, #tpu.memory_space<vmem>>, %arg6: memref<128x128xf32, #tpu.memory_space<vmem>>, %arg7: memref<1x128xf32, #tpu.memory_space<vmem>>, %arg8: memref<16x128xf32, #tpu.memory_space<vmem>>) attributes {dimension_semantics = [#tpu.dimension_semantics<parallel>], iteration_bounds = array<i64: 1>, scalar_prefetch = 0 : i64, scratch_operands = 0 : i64, tpu.core_type = #tpu.core_type<tc>, window_params = [{transform_indices = @transform_0, window_bounds = array<i64: 16, 128>}, {pipeline_mode = #tpu.pipeline_mode<synchronous>, transform_indices = @transform_1, window_bounds = array<i64: 128, 128>}, {pipeline_mode = #tpu.pipeline_mode<synchronous>, transform_indices = @transform_2, window_bounds = array<i64: 1, 128>}, {pipeline_mode = #tpu.pipeline_mode<synchronous>, transform_indices = @transform_3, window_bounds = array<i64: 128, 128>}, {pipeline_mode = #tpu.pipeline_mode<synchronous>, transform_indices = @transform_4, window_bounds = array<i64: 1, 128>}, {pipeline_mode = #tpu.pipeline_mode<synchronous>, transform_indices = @transform_5, window_bounds = array<i64: 128, 128>}, {pipeline_mode = #tpu.pipeline_mode<synchronous>, transform_indices = @transform_6, window_bounds = array<i64: 1, 128>}, {transform_indices = @transform_7, window_bounds = array<i64: 16, 128>}]} {
    %c0 = arith.constant 0 : index
    %c0_0 = arith.constant 0 : index
    %0 = vector.load %arg1[%c0, %c0_0] : memref<16x128xf32, #tpu.memory_space<vmem>>, vector<16x128xf32>
    %c0_1 = arith.constant 0 : index
    %c0_2 = arith.constant 0 : index
    %1 = vector.load %arg2[%c0_1, %c0_2] : memref<128x128xf32, #tpu.memory_space<vmem>>, vector<128x128xf32>
    %cst = arith.constant dense<0.000000e+00> : vector<16x128xf32>
    %2 = tpu.matmul %0, %1, %cst {dimension_numbers = #tpu.dot_dimension_numbers<[1], [0], [0], [1], [0, 0, 1, 1], [], []>} : vector<16x128xf32>, vector<128x128xf32>, vector<16x128xf32> -> vector<16x128xf32>
    %c0_3 = arith.constant 0 : index
    %c0_4 = arith.constant 0 : index
    %3 = vector.load %arg3[%c0_3, %c0_4] : memref<1x128xf32, #tpu.memory_space<vmem>>, vector<1x128xf32>
    %4 = vector.broadcast %3 : vector<1x128xf32> to vector<16x128xf32>
    %5 = arith.addf %2, %4 : vector<16x128xf32>
    %cst_5 = arith.constant 0.000000e+00 : f32
    %6 = vector.broadcast %cst_5 : f32 to vector<16x128xf32>
    %7 = arith.maximumf %5, %6 : vector<16x128xf32>
    %c0_6 = arith.constant 0 : index
    %c0_7 = arith.constant 0 : index
    %8 = vector.load %arg4[%c0_6, %c0_7] : memref<128x128xf32, #tpu.memory_space<vmem>>, vector<128x128xf32>
    %cst_8 = arith.constant dense<0.000000e+00> : vector<16x128xf32>
    %9 = tpu.matmul %7, %8, %cst_8 {dimension_numbers = #tpu.dot_dimension_numbers<[1], [0], [0], [1], [0, 0, 1, 1], [], []>} : vector<16x128xf32>, vector<128x128xf32>, vector<16x128xf32> -> vector<16x128xf32>
    %c0_9 = arith.constant 0 : index
    %c0_10 = arith.constant 0 : index
    %10 = vector.load %arg5[%c0_9, %c0_10] : memref<1x128xf32, #tpu.memory_space<vmem>>, vector<1x128xf32>
    %11 = vector.broadcast %10 : vector<1x128xf32> to vector<16x128xf32>
    %12 = arith.addf %9, %11 : vector<16x128xf32>
    %cst_11 = arith.constant 0.000000e+00 : f32
    %13 = vector.broadcast %cst_11 : f32 to vector<16x128xf32>
    %14 = arith.maximumf %12, %13 : vector<16x128xf32>
    %c0_12 = arith.constant 0 : index
    %c0_13 = arith.constant 0 : index
    %15 = vector.load %arg6[%c0_12, %c0_13] : memref<128x128xf32, #tpu.memory_space<vmem>>, vector<128x128xf32>
    %cst_14 = arith.constant dense<0.000000e+00> : vector<16x128xf32>
    %16 = tpu.matmul %14, %15, %cst_14 {dimension_numbers = #tpu.dot_dimension_numbers<[1], [0], [0], [1], [0, 0, 1, 1], [], []>} : vector<16x128xf32>, vector<128x128xf32>, vector<16x128xf32> -> vector<16x128xf32>
    %c0_15 = arith.constant 0 : index
    %c0_16 = arith.constant 0 : index
    %17 = vector.load %arg7[%c0_15, %c0_16] : memref<1x128xf32, #tpu.memory_space<vmem>>, vector<1x128xf32>
    %18 = vector.broadcast %17 : vector<1x128xf32> to vector<16x128xf32>
    %19 = arith.addf %16, %18 : vector<16x128xf32>
    %c0_17 = arith.constant 0 : index
    %c0_18 = arith.constant 0 : index
    %20 = vector.load %arg8[%c0_17, %c0_18] : memref<16x128xf32, #tpu.memory_space<vmem>>, vector<16x128xf32>
    tpu.vector_store %arg8[%c0_17, %c0_18], %19 {strides = array<i32>} : memref<16x128xf32, #tpu.memory_space<vmem>>, vector<16x128xf32>,
    return
  }
  func.func @transform_0(%arg0: i32) -> (i32, i32) {
    %c0_i32 = arith.constant 0 : i32
    %c0_i32_0 = arith.constant 0 : i32
    return %arg0, %c0_i32 : i32, i32
  }
  func.func @transform_1(%arg0: i32) -> (i32, i32) {
    %c0_i32 = arith.constant 0 : i32
    %c0_i32_0 = arith.constant 0 : i32
    %c0_i32_1 = arith.constant 0 : i32
    return %c0_i32, %c0_i32_0 : i32, i32
  }
  func.func @transform_2(%arg0: i32) -> (i32, i32) {
    %c0_i32 = arith.constant 0 : i32
    %c0_i32_0 = arith.constant 0 : i32
    %c0_i32_1 = arith.constant 0 : i32
    return %c0_i32, %c0_i32_0 : i32, i32
  }
  func.func @transform_3(%arg0: i32) -> (i32, i32) {
    %c0_i32 = arith.constant 0 : i32
    %c0_i32_0 = arith.constant 0 : i32
    %c0_i32_1 = arith.constant 0 : i32
    return %c0_i32, %c0_i32_0 : i32, i32
  }
  func.func @transform_4(%arg0: i32) -> (i32, i32) {
    %c0_i32 = arith.constant 0 : i32
    %c0_i32_0 = arith.constant 0 : i32
    %c0_i32_1 = arith.constant 0 : i32
    return %c0_i32, %c0_i32_0 : i32, i32
  }
  func.func @transform_5(%arg0: i32) -> (i32, i32) {
    %c0_i32 = arith.constant 0 : i32
    %c0_i32_0 = arith.constant 0 : i32
    %c0_i32_1 = arith.constant 0 : i32
    return %c0_i32, %c0_i32_0 : i32, i32
  }
  func.func @transform_6(%arg0: i32) -> (i32, i32) {
    %c0_i32 = arith.constant 0 : i32
    %c0_i32_0 = arith.constant 0 : i32
    %c0_i32_1 = arith.constant 0 : i32
    return %c0_i32, %c0_i32_0 : i32, i32
  }
  func.func @transform_7(%arg0: i32) -> (i32, i32) {
    %c0_i32 = arith.constant 0 : i32
    %c0_i32_0 = arith.constant 0 : i32
    return %arg0, %c0_i32 : i32, i32
  }
}

module attributes {stable_mosaic.version = 11 : i64} {
  func.func @_fused_mlp_kernel(%arg0: i32, %arg1: memref<16x128xf32, #tpu.memory_space<vmem>>, %arg2: memref<128x128xf32, #tpu.memory_space<vmem>>, %arg3: memref<1x128xf32, #tpu.memory_space<vmem>>, %arg4: memref<128x128xf32, #tpu.memory_space<vmem>>, %arg5: memref<1x128xf32, #tpu.memory_space<vmem>>, %arg6: memref<128x128xf32, #tpu.memory_space<vmem>>, %arg7: memref<1x128xf32, #tpu.memory_space<vmem>>, %arg8: memref<16x128xf32, #tpu.memory_space<vmem>>) attributes {dimension_semantics = [#tpu.dimension_semantics<parallel>], iteration_bounds = array<i64: 1>, scalar_prefetch = 0 : i64, scratch_operands = 0 : i64, tpu.core_type = #tpu.core_type<tc>, window_params = [{transform_indices = @transform_0, window_bounds = array<i64: 16, 128>}, {pipeline_mode = #tpu.pipeline_mode<synchronous>, transform_indices = @transform_1, window_bounds = array<i64: 128, 128>}, {pipeline_mode = #tpu.pipeline_mode<synchronous>, transform_indices = @transform_2, window_bounds = array<i64: 1, 128>}, {pipeline_mode = #tpu.pipeline_mode<synchronous>, transform_indices = @transform_3, window_bounds = array<i64: 128, 128>}, {pipeline_mode = #tpu.pipeline_mode<synchronous>, transform_indices = @transform_4, window_bounds = array<i64: 1, 128>}, {pipeline_mode = #tpu.pipeline_mode<synchronous>, transform_indices = @transform_5, window_bounds = array<i64: 128, 128>}, {pipeline_mode = #tpu.pipeline_mode<synchronous>, transform_indices = @transform_6, window_bounds = array<i64: 1, 128>}, {transform_indices = @transform_7, window_bounds = array<i64: 16, 128>}]} {
    %c0 = arith.constant 0 : index
    %c0_0 = arith.constant 0 : index
    %0 = vector.load %arg1[%c0, %c0_0] : memref<16x128xf32, #tpu.memory_space<vmem>>, vector<16x128xf32>
    %c0_1 = arith.constant 0 : index
    %c0_2 = arith.constant 0 : index
    %1 = vector.load %arg2[%c0_1, %c0_2] : memref<128x128xf32, #tpu.memory_space<vmem>>, vector<128x128xf32>
    %cst = arith.constant dense<0.000000e+00> : vector<16x128xf32>
    %2 = tpu.matmul %0, %1, %cst {dimension_numbers = #tpu.dot_dimension_numbers<[1], [0], [0], [1], [0, 0, 1, 1], [], []>} : vector<16x128xf32>, vector<128x128xf32>, vector<16x128xf32> -> vector<16x128xf32>
    %c0_3 = arith.constant 0 : index
    %c0_4 = arith.constant 0 : index
    %3 = vector.load %arg3[%c0_3, %c0_4] : memref<1x128xf32, #tpu.memory_space<vmem>>, vector<1x128xf32>
    %4 = vector.broadcast %3 : vector<1x128xf32> to vector<16x128xf32>
    %5 = arith.addf %2, %4 : vector<16x128xf32>
    %cst_5 = arith.constant 0.000000e+00 : f32
    %6 = vector.broadcast %cst_5 : f32 to vector<16x128xf32>
    %7 = arith.maximumf %5, %6 : vector<16x128xf32>
    %c0_6 = arith.constant 0 : index
    %c0_7 = arith.constant 0 : index
    %8 = vector.load %arg4[%c0_6, %c0_7] : memref<128x128xf32, #tpu.memory_space<vmem>>, vector<128x128xf32>
    %cst_8 = arith.constant dense<0.000000e+00> : vector<16x128xf32>
    %9 = tpu.matmul %7, %8, %cst_8 {dimension_numbers = #tpu.dot_dimension_numbers<[1], [0], [0], [1], [0, 0, 1, 1], [], []>} : vector<16x128xf32>, vector<128x128xf32>, vector<16x128xf32> -> vector<16x128xf32>
    %c0_9 = arith.constant 0 : index
    %c0_10 = arith.constant 0 : index
    %10 = vector.load %arg5[%c0_9, %c0_10] : memref<1x128xf32, #tpu.memory_space<vmem>>, vector<1x128xf32>
    %11 = vector.broadcast %10 : vector<1x128xf32> to vector<16x128xf32>
    %12 = arith.addf %9, %11 : vector<16x128xf32>
    %cst_11 = arith.constant 0.000000e+00 : f32
    %13 = vector.broadcast %cst_11 : f32 to vector<16x128xf32>
    %14 = arith.maximumf %12, %13 : vector<16x128xf32>
    %c0_12 = arith.constant 0 : index
    %c0_13 = arith.constant 0 : index
    %15 = vector.load %arg6[%c0_12, %c0_13] : memref<128x128xf32, #tpu.memory_space<vmem>>, vector<128x128xf32>
    %cst_14 = arith.constant dense<0.000000e+00> : vector<16x128xf32>
    %16 = tpu.matmul %14, %15, %cst_14 {dimension_numbers = #tpu.dot_dimension_numbers<[1], [0], [0], [1], [0, 0, 1, 1], [], []>} : vector<16x128xf32>, vector<128x128xf32>, vector<16x128xf32> -> vector<16x128xf32>
    %c0_15 = arith.constant 0 : index
    %c0_16 = arith.constant 0 : index
    %17 = vector.load %arg7[%c0_15, %c0_16] : memref<1x128xf32, #tpu.memory_space<vmem>>, vector<1x128xf32>
    %18 = vector.broadcast %17 : vector<1x128xf32> to vector<16x128xf32>
    %19 = arith.addf %16, %18 : vector<16x128xf32>
    %c0_17 = arith.constant 0 : index
    %c0_18 = arith.constant 0 : index
    %20 = vector.load %arg8[%c0_17, %c0_18] : memref<16x128xf32, #tpu.memory_space<vmem>>, vector<16x128xf32>
    tpu.vector_store %arg8[%c0_17, %c0_18], %19 {strides = array<i32>} : memref<16x128xf32, #tpu.memory_space<vmem>>, vector<16x128xf32>,
    return
  }
  func.func @transform_0(%arg0: i32) -> (i32, i32) {
    %c0_i32 = arith.constant 0 : i32
    %c0_i32_0 = arith.constant 0 : i32
    return %arg0, %c0_i32 : i32, i32
  }
  func.func @transform_1(%arg0: i32) -> (i32, i32) {
    %c0_i32 = arith.constant 0 : i32
    %c0_i32_0 = arith.constant 0 : i32
    %c0_i32_1 = arith.constant 0 : i32
    return %c0_i32, %c0_i32_0 : i32, i32
  }
  func.func @transform_2(%arg0: i32) -> (i32, i32) {
    %c0_i32 = arith.constant 0 : i32
    %c0_i32_0 = arith.constant 0 : i32
    %c0_i32_1 = arith.constant 0 : i32
    return %c0_i32, %c0_i32_0 : i32, i32
  }
  func.func @transform_3(%arg0: i32) -> (i32, i32) {
    %c0_i32 = arith.constant 0 : i32
    %c0_i32_0 = arith.constant 0 : i32
    %c0_i32_1 = arith.constant 0 : i32
    return %c0_i32, %c0_i32_0 : i32, i32
  }
  func.func @transform_4(%arg0: i32) -> (i32, i32) {
    %c0_i32 = arith.constant 0 : i32
    %c0_i32_0 = arith.constant 0 : i32
    %c0_i32_1 = arith.constant 0 : i32
    return %c0_i32, %c0_i32_0 : i32, i32
  }
  func.func @transform_5(%arg0: i32) -> (i32, i32) {
    %c0_i32 = arith.constant 0 : i32
    %c0_i32_0 = arith.constant 0 : i32
    %c0_i32_1 = arith.constant 0 : i32
    return %c0_i32, %c0_i32_0 : i32, i32
  }
  func.func @transform_6(%arg0: i32) -> (i32, i32) {
    %c0_i32 = arith.constant 0 : i32
    %c0_i32_0 = arith.constant 0 : i32
    %c0_i32_1 = arith.constant 0 : i32
    return %c0_i32, %c0_i32_0 : i32, i32
  }
  func.func @transform_7(%arg0: i32) -> (i32, i32) {
    %c0_i32 = arith.constant 0 : i32
    %c0_i32_0 = arith.constant 0 : i32
    return %arg0, %c0_i32 : i32, i32
  }
}

</mosaic_0001>

<bundles_post_ra>
// kernel: tpu_custom_call.1
= control target key start
LH: loop header
LB: loop body
LE: loop exit
PB: predicated region body
PF: predicated region fallthrough
CT: control target
= control target key end

     0   :  { %12 = vsyncpa [#allocation3], 0  ;;  %s488_s0 = inlined_call_operand.hbm [shape: f32[16,128], index: 0, kind: input, shape index: {}]   ;;  %s489_s1 = inlined_call_operand.hbm [shape: f32[128,128], index: 1, kind: input, shape index: {}]   ;;  %s490_s2 = inlined_call_operand.vmem [shape: f32[1,128], index: 2, kind: input, shape index: {}]   ;;  %s491_s3 = inlined_call_operand.hbm [shape: f32[128,128], index: 3, kind: input, shape index: {}]   ;;  %s492_s4 = inlined_call_operand.vmem [shape: f32[1,128], index: 4, kind: input, shape index: {}]   ;;  %s493_s5 = inlined_call_operand.hbm [shape: f32[128,128], index: 5, kind: input, shape index: {}]   ;;  %s494_s6 = inlined_call_operand.vmem [shape: f32[1,128], index: 6, kind: input, shape index: {}]   ;;  %s495_s7 = inlined_call_operand.hbm [shape: f32[16,128], index: 7, kind: output, shape index: {}]  }
   0x1   :  { %13 = vsyncpa [#allocation6], 0 }
   0x2   :  { %14 = vsyncpa [#allocation9], 0 }
   0x3   :  { %15 = vsyncpa [#allocation4], 0  ;;  %s33_s26 = sshll.u32 %s489_s1, 4  ;;  %s402_s27 = smov [#allocation5]   ;;  %s34_s26 = int_to_ptr.hbm [resolvable:$true] %s33_s26 }
   0x4   :  { %s35_s28 = sshll.u32 %s402_s27, 4  ;;  %s20_s8 = sshll.u32 %s488_s0, 4  ;;  %s36_s28 = int_to_ptr.vmem [resolvable:$true] %s35_s28  ;;  %s21_s8 = int_to_ptr.hbm [resolvable:$true] %s20_s8 }
   0x5   :  { %s403_s9 = smov 128   ;;  %s404_s10 = smov 8  }
   0x6   :  { %41 = dma.hbm_to_vmem [thread:$0]  %s34_s26, 2048, %s36_s28, [#allocation6], %s403_s9, %s403_s9, %s404_s10  }
   0x7   :  { %s405_s11 = smov [#allocation2]   ;;  %s48_s1 = sshll.u32 %s491_s3, 4  ;;  %s49_s1 = int_to_ptr.hbm [resolvable:$true] %s48_s1 }
   0x8   :  { %s22_s12 = sshll.u32 %s405_s11, 4  ;;  %s63_s16 = sshll.u32 %s493_s5, 4  ;;  %s23_s12 = int_to_ptr.vmem [resolvable:$true] %s22_s12  ;;  %s64_s16 = int_to_ptr.hbm [resolvable:$true] %s63_s16 }
   0x9   :  { %28 = dma.hbm_to_vmem [thread:$0]  %s21_s8, 256, %s23_s12, [#allocation3], %s403_s9, %s403_s9, %s404_s10  }
   0xa   :  { %s406_s17 = smov [#allocation7]   ;;  %s407_s19 = smov [#allocation8]  }
   0xb   :  { %s50_s18 = sshll.u32 %s406_s17, 4  ;;  %s65_s3 = sshll.u32 %s407_s19, 4  ;;  %s51_s18 = int_to_ptr.vmem [resolvable:$true] %s50_s18  ;;  %s66_s3 = int_to_ptr.vmem [resolvable:$true] %s65_s3 }
   0xc   :  { %56 = dma.hbm_to_vmem [thread:$0]  %s49_s1, 2048, %s51_s18, [#allocation6], %s403_s9, %s403_s9, %s404_s10  }
   0xd   :  { %71 = dma.hbm_to_vmem [thread:$0]  %s64_s16, 2048, %s66_s3, [#allocation9], %s403_s9, %s403_s9, %s404_s10  }
   0xe   :  { %394 = dma.done.wait [#allocation3], 256  }
   0xf   :  { %395 = vsyncadd [#allocation3], 4294967040 }
  0x10   :  { %396 = dma.done.wait [#allocation6], 4096  }
  0x11   :  { %397 = vsyncadd [#allocation6], 4294963200 }
  0x12   :  { %398 = dma.done.wait [#allocation9], 2048  }
  0x13   :  { %399 = vsyncadd [#allocation9], 4294965248  ;;  %v107_v0 = vld [vmem:[#allocation5 + $0x78] sm:$0xff]  ;;  %v106_v1 = vld [vmem:[#allocation5 + $0x70] sm:$0xff]  ;;  %s408_s24 = smov [#allocation10]  }
  0x14   :  { %112 = vmatpush.msra.mxu0 %v107_v0  ;;  %248 = vmatpush.msra.mxu3 %v107_v0  ;;  %v105_v2 = vld [vmem:[#allocation5 + $0x68] sm:$0xff]  ;;  %v104_v3 = vld [vmem:[#allocation5 + $0x60] sm:$0xff]  ;;  %v103_v4 = vld [vmem:[#allocation5 + $0x58] sm:$0xff]  ;;  %s231_s25 = sshll.u32 %s408_s24, 4  ;;  %s232_s25 = int_to_ptr.vmem [resolvable:$true] %s231_s25 }
  0x15   :  { %v152_v5 = vld [vmem:[#allocation7 + $0x78] sm:$0xff]  ;;  %v151_v6 = vld [vmem:[#allocation7 + $0x70] sm:$0xff]  ;;  %v150_v8 = vld [vmem:[#allocation7 + $0x68] sm:$0xff] }
  0x16   :  { %113 = vmatpush.msra.mxu0 %v106_v1  ;;  %249 = vmatpush.msra.mxu3 %v106_v1  ;;  %v102_v7 = vld [vmem:[#allocation5 + $0x50] sm:$0xff]  ;;  %v101_v9 = vld [vmem:[#allocation5 + $0x48] sm:$0xff]  ;;  %v149_v10 = vld [vmem:[#allocation7 + $0x60] sm:$0xff] }
  0x17   :  { %157 = vmatpush.msra.mxu1 %v152_v5  ;;  %v100_v11 = vld [vmem:[#allocation5 + $0x40] sm:$0xff]  ;;  %v148_v12 = vld [vmem:[#allocation7 + $0x58] sm:$0xff]  ;;  %v147_v14 = vld [vmem:[#allocation7 + $0x50] sm:$0xff] }
  0x18   :  { %114 = vmatpush.msra.mxu0 %v105_v2  ;;  %250 = vmatpush.msra.mxu3 %v105_v2  ;;  %v99_v13 = vld [vmem:[#allocation5 + $0x38] sm:$0xff]  ;;  %v98_v15 = vld [vmem:[#allocation5 + $0x30] sm:$0xff]  ;;  %v146_v16 = vld [vmem:[#allocation7 + $0x48] sm:$0xff] }
  0x19   :  { %158 = vmatpush.msra.mxu1 %v151_v6  ;;  %v97_v17 = vld [vmem:[#allocation5 + $0x28] sm:$0xff]  ;;  %v145_v18 = vld [vmem:[#allocation7 + $0x40] sm:$0xff]  ;;  %v144_v20 = vld [vmem:[#allocation7 + $0x38] sm:$0xff] }
  0x1a   :  { %115 = vmatpush.msra.mxu0 %v104_v3  ;;  %251 = vmatpush.msra.mxu3 %v104_v3  ;;  %v96_v19 = vld [vmem:[#allocation5 + $0x20] sm:$0xff]  ;;  %v95_v21 = vld [vmem:[#allocation5 + $0x18] sm:$0xff]  ;;  %v143_v22 = vld [vmem:[#allocation7 + $0x30] sm:$0xff] }
  0x1b   :  { %159 = vmatpush.msra.mxu1 %v150_v8  ;;  %v94_v23 = vld [vmem:[#allocation5 + $0x10] sm:$0xff]  ;;  %v142_v24 = vld [vmem:[#allocation7 + $0x28] sm:$0xff]  ;;  %v141_v26 = vld [vmem:[#allocation7 + $0x20] sm:$0xff] }
  0x1c   :  { %116 = vmatpush.msra.mxu0 %v103_v4  ;;  %252 = vmatpush.msra.mxu3 %v103_v4  ;;  %v93_v25 = vld [vmem:[#allocation5 + $0x8] sm:$0xff]  ;;  %v92_v27 = vld [vmem:[#allocation5] sm:$0xff]  ;;  %v90_v28 = vld [vmem:[#allocation2] sm:$0xff] }
  0x1d   :  { %160 = vmatpush.msra.mxu1 %v149_v10  ;;  %v91_v29 = vld [vmem:[#allocation2 + $0x8] sm:$0xff]  ;;  %v139_v31 = vld [vmem:[#allocation7 + $0x10] sm:$0xff]  ;;  %v138_v32 = vld [vmem:[#allocation7 + $0x8] sm:$0xff] }
  0x1e   :  { %117 = vmatpush.msra.mxu0 %v102_v7  ;;  %253 = vmatpush.msra.mxu3 %v102_v7  ;;  %v140_v30 = vld [vmem:[#allocation7 + $0x18] sm:$0xff]  ;;  %v137_v33 = vld [vmem:[#allocation7] sm:$0xff]  ;;  %v196_v35 = vld [vmem:[#allocation8 + $0x70] sm:$0xff] }
  0x1f   :  { %161 = vmatpush.msra.mxu1 %v148_v12  ;;  %v197_v34 = vld [vmem:[#allocation8 + $0x78] sm:$0xff]  ;;  %v195_v36 = vld [vmem:[#allocation8 + $0x68] sm:$0xff]  ;;  %v194_v37 = vld [vmem:[#allocation8 + $0x60] sm:$0xff] }
  0x20   :  { %118 = vmatpush.msra.mxu0 %v101_v9  ;;  %254 = vmatpush.msra.mxu3 %v101_v9  ;;  %v193_v38 = vld [vmem:[#allocation8 + $0x58] sm:$0xff]  ;;  %v192_v39 = vld [vmem:[#allocation8 + $0x50] sm:$0xff]  ;;  %v191_v40 = vld [vmem:[#allocation8 + $0x48] sm:$0xff] }
  0x21   :  { %162 = vmatpush.msra.mxu1 %v147_v14  ;;  %202 = vmatpush.msra.mxu2 %v197_v34  ;;  %v190_v41 = vld [vmem:[#allocation8 + $0x40] sm:$0xff]  ;;  %v189_v42 = vld [vmem:[#allocation8 + $0x38] sm:$0xff]  ;;  %v271_v43 = vld [vmem:[%s490_s2] ss:$0 sm:$0xff] }
  0x22   :  { %119 = vmatpush.msra.mxu0 %v100_v11  ;;  %255 = vmatpush.msra.mxu3 %v100_v11  ;;  %v188_v44 = vld [vmem:[#allocation8 + $0x30] sm:$0xff]  ;;  %v187_v45 = vld [vmem:[#allocation8 + $0x28] sm:$0xff]  ;;  %v186_v48 = vld [vmem:[#allocation8 + $0x20] sm:$0xff] }
  0x23   :  { %163 = vmatpush.msra.mxu1 %v146_v16  ;;  %203 = vmatpush.msra.mxu2 %v196_v35  ;;  %v185_v50 = vld [vmem:[#allocation8 + $0x18] sm:$0xff]  ;;  %v184_v54 = vld [vmem:[#allocation8 + $0x10] sm:$0xff]  ;;  %v183_v55 = vld [vmem:[#allocation8 + $0x8] sm:$0xff] }
  0x24   :  { %120 = vmatpush.msra.mxu0 %v99_v13  ;;  %256 = vmatpush.msra.mxu3 %v99_v13  ;;  %v182_v56 = vld [vmem:[#allocation8] sm:$0xff]  ;;  %v272_v57 = vld [vmem:[%s492_s4] ss:$0 sm:$0xff]  ;;  %s233_s4 = sshll.u32 %s495_s7, 4  ;;  %s234_s4 = int_to_ptr.hbm [resolvable:$true] %s233_s4 }
  0x25   :  { %164 = vmatpush.msra.mxu1 %v145_v18  ;;  %204 = vmatpush.msra.mxu2 %v195_v36  ;;  %v273_v0 = vld [vmem:[%s494_s6] ss:$0 sm:$0xff] }
  0x26   :  { %121 = vmatpush.msra.mxu0 %v98_v15  ;;  %257 = vmatpush.msra.mxu3 %v98_v15 }
  0x27   :  { %165 = vmatpush.msra.mxu1 %v144_v20  ;;  %205 = vmatpush.msra.mxu2 %v194_v37 }
  0x28   :  { %122 = vmatpush.msra.mxu0 %v97_v17  ;;  %258 = vmatpush.msra.mxu3 %v97_v17 }
  0x29   :  { %166 = vmatpush.msra.mxu1 %v143_v22  ;;  %206 = vmatpush.msra.mxu2 %v193_v38 }
  0x2a   :  { %123 = vmatpush.msra.mxu0 %v96_v19  ;;  %259 = vmatpush.msra.mxu3 %v96_v19 }
  0x2b   :  { %167 = vmatpush.msra.mxu1 %v142_v24  ;;  %207 = vmatpush.msra.mxu2 %v192_v39 }
  0x2c   :  { %124 = vmatpush.msra.mxu0 %v95_v21  ;;  %260 = vmatpush.msra.mxu3 %v95_v21 }
  0x2d   :  { %168 = vmatpush.msra.mxu1 %v141_v26  ;;  %208 = vmatpush.msra.mxu2 %v191_v40 }
  0x2e   :  { %125 = vmatpush.msra.mxu0 %v94_v23  ;;  %261 = vmatpush.msra.mxu3 %v94_v23 }
  0x2f   :  { %169 = vmatpush.msra.mxu1 %v140_v30  ;;  %209 = vmatpush.msra.mxu2 %v190_v41 }
  0x30   :  { %126 = vmatpush.msra.mxu0 %v93_v25  ;;  %262 = vmatpush.msra.mxu3 %v93_v25 }
  0x31   :  { %170 = vmatpush.msra.mxu1 %v139_v31  ;;  %210 = vmatpush.msra.mxu2 %v189_v42 }
  0x32   :  { %127 = vmatpush.msra.mxu0 %v92_v27  ;;  %263 = vmatpush.msra.mxu3 %v92_v27 }
  0x33   :  { %128 = vmatmul.f32.vlgmr.msra.gmra.mxu0 %v90_v28  ;;  %131 = vmatmul.f32.vlgmr.msra.gmra.mxu3 %v91_v29 }
  0x34   :  { %171 = vmatpush.msra.mxu1 %v138_v32  ;;  %211 = vmatpush.msra.mxu2 %v188_v44 }
  0x36   :  { %172 = vmatpush.msra.mxu1 %v137_v33  ;;  %212 = vmatpush.msra.mxu2 %v187_v45 }
  0x38   :  { %213 = vmatpush.msra.mxu2 %v186_v48 }
  0x3a   :  { %214 = vmatpush.msra.mxu2 %v185_v50 }
  0x3c   :  { %215 = vmatpush.msra.mxu2 %v184_v54 }
  0x3e   :  { %216 = vmatpush.msra.mxu2 %v183_v55 }
  0x40   :  { %217 = vmatpush.msra.mxu2 %v182_v56 }
  0xb0   :  { %v129_v46 = vpop.f32.mrf.mxu0 }
  0xb1   :  { %v130_v47 = vadd.f32 %v271_v43, %v129_v46 }
  0xb3   :  { %v135_v49 = vmax.f32 %v130_v47, 0.0 }
  0xb5   :  { %173 = vmatmul.f32.vlgmr.msra.gmra.mxu1 %v135_v49 }
  0xb6   :  { %v132_v51 = vpop.f32.mrf.mxu3 }
  0xb7   :  { %v133_v52 = vadd.f32 %v271_v43, %v132_v51 }
  0xb9   :  { %v136_v53 = vmax.f32 %v133_v52, 0.0 }
  0xbd   :  { %176 = vmatmul.f32.gmra.mxu1 %v136_v53 }
 0x132   :  { %v174_v58 = vpop.f32.mrf.mxu1 }
 0x133   :  { %v175_v59 = vadd.f32 %v272_v57, %v174_v58 }
 0x135   :  { %v180_v60 = vmax.f32 %v175_v59, 0.0 }
 0x137   :  { %218 = vmatmul.f32.vlgmr.msra.gmra.mxu2 %v180_v60 }
 0x13a   :  { %v177_v61 = vpop.f32.mrf.mxu1 }
 0x13b   :  { %v178_v62 = vadd.f32 %v272_v57, %v177_v61 }
 0x13d   :  { %v181_v63 = vmax.f32 %v178_v62, 0.0 }
 0x13f   :  { %221 = vmatmul.f32.gmra.mxu2 %v181_v63 }
 0x1ba   :  { %v219_v1 = vpop.f32.mrf.mxu2 }
 0x1bb   :  { %v220_v2 = vadd.f32 %v273_v0, %v219_v1 }
 0x1bd   :  { %225 = vst [vmem:[#allocation10] sm:$0xff] %v220_v2 }
 0x1c2   :  { %v222_v3 = vpop.f32.mrf.mxu2 }
 0x1c3   :  { %v223_v4 = vadd.f32 %v273_v0, %v222_v3 }
 0x1c5   :  { %226 = vst [vmem:[#allocation10 + $0x8] sm:$0xff] %v223_v4 }
 0x1c6   :  { %239 = dma.vmem_to_hbm [thread:$0]  %s232_s25, 256, %s234_s4, [#allocation4], %s403_s9, %s403_s9, %s404_s10  }
 0x1c7   :  { %400 = dma.done.wait [#allocation4], 256  }
 0x1c8   :  { %401 = vsyncadd [#allocation4], 4294967040 }
 0x1c9   :  { %244 = vsyncpa [#allocation3], 1 }
 0x1ca   :  { %245 = vsyncpa [#allocation6], 1 }
 0x1cb   :  { %246 = vsyncpa [#allocation9], 1 }
 0x1cc   :  { %247 = vsyncpa [#allocation4], 1 }

// kernel: tpu_custom_call.1
= control target key start
LH: loop header
LB: loop body
LE: loop exit
PB: predicated region body
PF: predicated region fallthrough
CT: control target
= control target key end

     0   :  { %12 = vsyncpa [#allocation3], 0  ;;  %s488_s0 = inlined_call_operand.hbm [shape: f32[16,128], index: 0, kind: input, shape index: {}]   ;;  %s489_s1 = inlined_call_operand.hbm [shape: f32[128,128], index: 1, kind: input, shape index: {}]   ;;  %s490_s2 = inlined_call_operand.vmem [shape: f32[1,128], index: 2, kind: input, shape index: {}]   ;;  %s491_s3 = inlined_call_operand.hbm [shape: f32[128,128], index: 3, kind: input, shape index: {}]   ;;  %s492_s4 = inlined_call_operand.vmem [shape: f32[1,128], index: 4, kind: input, shape index: {}]   ;;  %s493_s5 = inlined_call_operand.hbm [shape: f32[128,128], index: 5, kind: input, shape index: {}]   ;;  %s494_s6 = inlined_call_operand.vmem [shape: f32[1,128], index: 6, kind: input, shape index: {}]   ;;  %s495_s7 = inlined_call_operand.hbm [shape: f32[16,128], index: 7, kind: output, shape index: {}]  }
   0x1   :  { %13 = vsyncpa [#allocation6], 0 }
   0x2   :  { %14 = vsyncpa [#allocation9], 0 }
   0x3   :  { %15 = vsyncpa [#allocation4], 0  ;;  %s33_s26 = sshll.u32 %s489_s1, 4  ;;  %s402_s27 = smov [#allocation5]   ;;  %s34_s26 = int_to_ptr.hbm [resolvable:$true] %s33_s26 }
   0x4   :  { %s35_s28 = sshll.u32 %s402_s27, 4  ;;  %s20_s8 = sshll.u32 %s488_s0, 4  ;;  %s36_s28 = int_to_ptr.vmem [resolvable:$true] %s35_s28  ;;  %s21_s8 = int_to_ptr.hbm [resolvable:$true] %s20_s8 }
   0x5   :  { %s403_s9 = smov 128   ;;  %s404_s10 = smov 8  }
   0x6   :  { %41 = dma.hbm_to_vmem [thread:$0]  %s34_s26, 2048, %s36_s28, [#allocation6], %s403_s9, %s403_s9, %s404_s10  }
   0x7   :  { %s405_s11 = smov [#allocation2]   ;;  %s48_s1 = sshll.u32 %s491_s3, 4  ;;  %s49_s1 = int_to_ptr.hbm [resolvable:$true] %s48_s1 }
   0x8   :  { %s22_s12 = sshll.u32 %s405_s11, 4  ;;  %s63_s16 = sshll.u32 %s493_s5, 4  ;;  %s23_s12 = int_to_ptr.vmem [resolvable:$true] %s22_s12  ;;  %s64_s16 = int_to_ptr.hbm [resolvable:$true] %s63_s16 }
   0x9   :  { %28 = dma.hbm_to_vmem [thread:$0]  %s21_s8, 256, %s23_s12, [#allocation3], %s403_s9, %s403_s9, %s404_s10  }
   0xa   :  { %s406_s17 = smov [#allocation7]   ;;  %s407_s19 = smov [#allocation8]  }
   0xb   :  { %s50_s18 = sshll.u32 %s406_s17, 4  ;;  %s65_s3 = sshll.u32 %s407_s19, 4  ;;  %s51_s18 = int_to_ptr.vmem [resolvable:$true] %s50_s18  ;;  %s66_s3 = int_to_ptr.vmem [resolvable:$true] %s65_s3 }
   0xc   :  { %56 = dma.hbm_to_vmem [thread:$0]  %s49_s1, 2048, %s51_s18, [#allocation6], %s403_s9, %s403_s9, %s404_s10  }
   0xd   :  { %71 = dma.hbm_to_vmem [thread:$0]  %s64_s16, 2048, %s66_s3, [#allocation9], %s403_s9, %s403_s9, %s404_s10  }
   0xe   :  { %394 = dma.done.wait [#allocation3], 256  }
   0xf   :  { %395 = vsyncadd [#allocation3], 4294967040 }
  0x10   :  { %396 = dma.done.wait [#allocation6], 4096  }
  0x11   :  { %397 = vsyncadd [#allocation6], 4294963200 }
  0x12   :  { %398 = dma.done.wait [#allocation9], 2048  }
  0x13   :  { %399 = vsyncadd [#allocation9], 4294965248  ;;  %v107_v0 = vld [vmem:[#allocation5 + $0x78] sm:$0xff]  ;;  %v106_v1 = vld [vmem:[#allocation5 + $0x70] sm:$0xff]  ;;  %s408_s24 = smov [#allocation10]  }
  0x14   :  { %112 = vmatpush.msra.mxu0 %v107_v0  ;;  %248 = vmatpush.msra.mxu3 %v107_v0  ;;  %v105_v2 = vld [vmem:[#allocation5 + $0x68] sm:$0xff]  ;;  %v104_v3 = vld [vmem:[#allocation5 + $0x60] sm:$0xff]  ;;  %v103_v4 = vld [vmem:[#allocation5 + $0x58] sm:$0xff]  ;;  %s231_s25 = sshll.u32 %s408_s24, 4  ;;  %s232_s25 = int_to_ptr.vmem [resolvable:$true] %s231_s25 }
  0x15   :  { %v152_v5 = vld [vmem:[#allocation7 + $0x78] sm:$0xff]  ;;  %v151_v6 = vld [vmem:[#allocation7 + $0x70] sm:$0xff]  ;;  %v150_v8 = vld [vmem:[#allocation7 + $0x68] sm:$0xff] }
  0x16   :  { %113 = vmatpush.msra.mxu0 %v106_v1  ;;  %249 = vmatpush.msra.mxu3 %v106_v1  ;;  %v102_v7 = vld [vmem:[#allocation5 + $0x50] sm:$0xff]  ;;  %v101_v9 = vld [vmem:[#allocation5 + $0x48] sm:$0xff]  ;;  %v149_v10 = vld [vmem:[#allocation7 + $0x60] sm:$0xff] }
  0x17   :  { %157 = vmatpush.msra.mxu1 %v152_v5  ;;  %v100_v11 = vld [vmem:[#allocation5 + $0x40] sm:$0xff]  ;;  %v148_v12 = vld [vmem:[#allocation7 + $0x58] sm:$0xff]  ;;  %v147_v14 = vld [vmem:[#allocation7 + $0x50] sm:$0xff] }
  0x18   :  { %114 = vmatpush.msra.mxu0 %v105_v2  ;;  %250 = vmatpush.msra.mxu3 %v105_v2  ;;  %v99_v13 = vld [vmem:[#allocation5 + $0x38] sm:$0xff]  ;;  %v98_v15 = vld [vmem:[#allocation5 + $0x30] sm:$0xff]  ;;  %v146_v16 = vld [vmem:[#allocation7 + $0x48] sm:$0xff] }
  0x19   :  { %158 = vmatpush.msra.mxu1 %v151_v6  ;;  %v97_v17 = vld [vmem:[#allocation5 + $0x28] sm:$0xff]  ;;  %v145_v18 = vld [vmem:[#allocation7 + $0x40] sm:$0xff]  ;;  %v144_v20 = vld [vmem:[#allocation7 + $0x38] sm:$0xff] }
  0x1a   :  { %115 = vmatpush.msra.mxu0 %v104_v3  ;;  %251 = vmatpush.msra.mxu3 %v104_v3  ;;  %v96_v19 = vld [vmem:[#allocation5 + $0x20] sm:$0xff]  ;;  %v95_v21 = vld [vmem:[#allocation5 + $0x18] sm:$0xff]  ;;  %v143_v22 = vld [vmem:[#allocation7 + $0x30] sm:$0xff] }
  0x1b   :  { %159 = vmatpush.msra.mxu1 %v150_v8  ;;  %v94_v23 = vld [vmem:[#allocation5 + $0x10] sm:$0xff]  ;;  %v142_v24 = vld [vmem:[#allocation7 + $0x28] sm:$0xff]  ;;  %v141_v26 = vld [vmem:[#allocation7 + $0x20] sm:$0xff] }
  0x1c   :  { %116 = vmatpush.msra.mxu0 %v103_v4  ;;  %252 = vmatpush.msra.mxu3 %v103_v4  ;;  %v93_v25 = vld [vmem:[#allocation5 + $0x8] sm:$0xff]  ;;  %v92_v27 = vld [vmem:[#allocation5] sm:$0xff]  ;;  %v90_v28 = vld [vmem:[#allocation2] sm:$0xff] }
  0x1d   :  { %160 = vmatpush.msra.mxu1 %v149_v10  ;;  %v91_v29 = vld [vmem:[#allocation2 + $0x8] sm:$0xff]  ;;  %v139_v31 = vld [vmem:[#allocation7 + $0x10] sm:$0xff]  ;;  %v138_v32 = vld [vmem:[#allocation7 + $0x8] sm:$0xff] }
  0x1e   :  { %117 = vmatpush.msra.mxu0 %v102_v7  ;;  %253 = vmatpush.msra.mxu3 %v102_v7  ;;  %v140_v30 = vld [vmem:[#allocation7 + $0x18] sm:$0xff]  ;;  %v137_v33 = vld [vmem:[#allocation7] sm:$0xff]  ;;  %v196_v35 = vld [vmem:[#allocation8 + $0x70] sm:$0xff] }
  0x1f   :  { %161 = vmatpush.msra.mxu1 %v148_v12  ;;  %v197_v34 = vld [vmem:[#allocation8 + $0x78] sm:$0xff]  ;;  %v195_v36 = vld [vmem:[#allocation8 + $0x68] sm:$0xff]  ;;  %v194_v37 = vld [vmem:[#allocation8 + $0x60] sm:$0xff] }
  0x20   :  { %118 = vmatpush.msra.mxu0 %v101_v9  ;;  %254 = vmatpush.msra.mxu3 %v101_v9  ;;  %v193_v38 = vld [vmem:[#allocation8 + $0x58] sm:$0xff]  ;;  %v192_v39 = vld [vmem:[#allocation8 + $0x50] sm:$0xff]  ;;  %v191_v40 = vld [vmem:[#allocation8 + $0x48] sm:$0xff] }
  0x21   :  { %162 = vmatpush.msra.mxu1 %v147_v14  ;;  %202 = vmatpush.msra.mxu2 %v197_v34  ;;  %v190_v41 = vld [vmem:[#allocation8 + $0x40] sm:$0xff]  ;;  %v189_v42 = vld [vmem:[#allocation8 + $0x38] sm:$0xff]  ;;  %v271_v43 = vld [vmem:[%s490_s2] ss:$0 sm:$0xff] }
  0x22   :  { %119 = vmatpush.msra.mxu0 %v100_v11  ;;  %255 = vmatpush.msra.mxu3 %v100_v11  ;;  %v188_v44 = vld [vmem:[#allocation8 + $0x30] sm:$0xff]  ;;  %v187_v45 = vld [vmem:[#allocation8 + $0x28] sm:$0xff]  ;;  %v186_v48 = vld [vmem:[#allocation8 + $0x20] sm:$0xff] }
  0x23   :  { %163 = vmatpush.msra.mxu1 %v146_v16  ;;  %203 = vmatpush.msra.mxu2 %v196_v35  ;;  %v185_v50 = vld [vmem:[#allocation8 + $0x18] sm:$0xff]  ;;  %v184_v54 = vld [vmem:[#allocation8 + $0x10] sm:$0xff]  ;;  %v183_v55 = vld [vmem:[#allocation8 + $0x8] sm:$0xff] }
  0x24   :  { %120 = vmatpush.msra.mxu0 %v99_v13  ;;  %256 = vmatpush.msra.mxu3 %v99_v13  ;;  %v182_v56 = vld [vmem:[#allocation8] sm:$0xff]  ;;  %v272_v57 = vld [vmem:[%s492_s4] ss:$0 sm:$0xff]  ;;  %s233_s4 = sshll.u32 %s495_s7, 4  ;;  %s234_s4 = int_to_ptr.hbm [resolvable:$true] %s233_s4 }
  0x25   :  { %164 = vmatpush.msra.mxu1 %v145_v18  ;;  %204 = vmatpush.msra.mxu2 %v195_v36  ;;  %v273_v0 = vld [vmem:[%s494_s6] ss:$0 sm:$0xff] }
  0x26   :  { %121 = vmatpush.msra.mxu0 %v98_v15  ;;  %257 = vmatpush.msra.mxu3 %v98_v15 }
  0x27   :  { %165 = vmatpush.msra.mxu1 %v144_v20  ;;  %205 = vmatpush.msra.mxu2 %v194_v37 }
  0x28   :  { %122 = vmatpush.msra.mxu0 %v97_v17  ;;  %258 = vmatpush.msra.mxu3 %v97_v17 }
  0x29   :  { %166 = vmatpush.msra.mxu1 %v143_v22  ;;  %206 = vmatpush.msra.mxu2 %v193_v38 }
  0x2a   :  { %123 = vmatpush.msra.mxu0 %v96_v19  ;;  %259 = vmatpush.msra.mxu3 %v96_v19 }
  0x2b   :  { %167 = vmatpush.msra.mxu1 %v142_v24  ;;  %207 = vmatpush.msra.mxu2 %v192_v39 }
  0x2c   :  { %124 = vmatpush.msra.mxu0 %v95_v21  ;;  %260 = vmatpush.msra.mxu3 %v95_v21 }
  0x2d   :  { %168 = vmatpush.msra.mxu1 %v141_v26  ;;  %208 = vmatpush.msra.mxu2 %v191_v40 }
  0x2e   :  { %125 = vmatpush.msra.mxu0 %v94_v23  ;;  %261 = vmatpush.msra.mxu3 %v94_v23 }
  0x2f   :  { %169 = vmatpush.msra.mxu1 %v140_v30  ;;  %209 = vmatpush.msra.mxu2 %v190_v41 }
  0x30   :  { %126 = vmatpush.msra.mxu0 %v93_v25  ;;  %262 = vmatpush.msra.mxu3 %v93_v25 }
  0x31   :  { %170 = vmatpush.msra.mxu1 %v139_v31  ;;  %210 = vmatpush.msra.mxu2 %v189_v42 }
  0x32   :  { %127 = vmatpush.msra.mxu0 %v92_v27  ;;  %263 = vmatpush.msra.mxu3 %v92_v27 }
  0x33   :  { %128 = vmatmul.f32.vlgmr.msra.gmra.mxu0 %v90_v28  ;;  %131 = vmatmul.f32.vlgmr.msra.gmra.mxu3 %v91_v29 }
  0x34   :  { %171 = vmatpush.msra.mxu1 %v138_v32  ;;  %211 = vmatpush.msra.mxu2 %v188_v44 }
  0x36   :  { %172 = vmatpush.msra.mxu1 %v137_v33  ;;  %212 = vmatpush.msra.mxu2 %v187_v45 }
  0x38   :  { %213 = vmatpush.msra.mxu2 %v186_v48 }
  0x3a   :  { %214 = vmatpush.msra.mxu2 %v185_v50 }
  0x3c   :  { %215 = vmatpush.msra.mxu2 %v184_v54 }
  0x3e   :  { %216 = vmatpush.msra.mxu2 %v183_v55 }
  0x40   :  { %217 = vmatpush.msra.mxu2 %v182_v56 }
  0xb0   :  { %v129_v46 = vpop.f32.mrf.mxu0 }
  0xb1   :  { %v130_v47 = vadd.f32 %v271_v43, %v129_v46 }
  0xb3   :  { %v135_v49 = vmax.f32 %v130_v47, 0.0 }
  0xb5   :  { %173 = vmatmul.f32.vlgmr.msra.gmra.mxu1 %v135_v49 }
  0xb6   :  { %v132_v51 = vpop.f32.mrf.mxu3 }
  0xb7   :  { %v133_v52 = vadd.f32 %v271_v43, %v132_v51 }
  0xb9   :  { %v136_v53 = vmax.f32 %v133_v52, 0.0 }
  0xbd   :  { %176 = vmatmul.f32.gmra.mxu1 %v136_v53 }
 0x132   :  { %v174_v58 = vpop.f32.mrf.mxu1 }
 0x133   :  { %v175_v59 = vadd.f32 %v272_v57, %v174_v58 }
 0x135   :  { %v180_v60 = vmax.f32 %v175_v59, 0.0 }
 0x137   :  { %218 = vmatmul.f32.vlgmr.msra.gmra.mxu2 %v180_v60 }
 0x13a   :  { %v177_v61 = vpop.f32.mrf.mxu1 }
 0x13b   :  { %v178_v62 = vadd.f32 %v272_v57, %v177_v61 }
 0x13d   :  { %v181_v63 = vmax.f32 %v178_v62, 0.0 }
 0x13f   :  { %221 = vmatmul.f32.gmra.mxu2 %v181_v63 }
 0x1ba   :  { %v219_v1 = vpop.f32.mrf.mxu2 }
 0x1bb   :  { %v220_v2 = vadd.f32 %v273_v0, %v219_v1 }
 0x1bd   :  { %225 = vst [vmem:[#allocation10] sm:$0xff] %v220_v2 }
 0x1c2   :  { %v222_v3 = vpop.f32.mrf.mxu2 }
 0x1c3   :  { %v223_v4 = vadd.f32 %v273_v0, %v222_v3 }
 0x1c5   :  { %226 = vst [vmem:[#allocation10 + $0x8] sm:$0xff] %v223_v4 }
 0x1c6   :  { %239 = dma.vmem_to_hbm [thread:$0]  %s232_s25, 256, %s234_s4, [#allocation4], %s403_s9, %s403_s9, %s404_s10  }
 0x1c7   :  { %400 = dma.done.wait [#allocation4], 256  }
 0x1c8   :  { %401 = vsyncadd [#allocation4], 4294967040 }
 0x1c9   :  { %244 = vsyncpa [#allocation3], 1 }
 0x1ca   :  { %245 = vsyncpa [#allocation6], 1 }
 0x1cb   :  { %246 = vsyncpa [#allocation9], 1 }
 0x1cc   :  { %247 = vsyncpa [#allocation4], 1 }

</bundles_post_ra>
